<compile_context>
chip_gen: v7x
topology: tpu7x:2x2x1
jax: 0.10.0
libtpu: 0.0.40
codegen_flags: <defaults>
</compile_context>

<pallas_src>
import functools

import jax
import jax.numpy as jnp
from jax import lax
from jax.experimental import pallas as pl
from jax.experimental.pallas import tpu as pltpu

# ---- problem constants (from nn.Conv2d(5, 1, 2) + nn.Dropout2d(0.5)) ----
C_IN = 5
C_OUT = 1
KH = KW = 2
P_DROP = 0.5

_CHUNK = 16          # sublane chunk held in vregs (multiple of 8; bf16 tile = 16)
_MAX_BLOCK = 512     # batch rows per grid step (cap)


def _round_up(a, b):
    return ((a + b - 1) // b) * b


def _pick_input_dtype():
    """bf16 input on v6e/v7x (halves input HBM bytes); f32 elsewhere (v5e has
    no native bf16 VPU)."""
    try:
        kind = jax.devices()[0].device_kind.lower()
    except Exception:
        return jnp.float32
    if "v6" in kind or "v7" in kind:
        return jnp.bfloat16
    return jnp.float32


def _conv_dropout_kernel(x_ref, scale_ref, w_ref, b_ref, o_ref, *, C, W, HW):
    """One block of B batch rows, processed in sublane chunks kept in vregs.

    x_ref    : VMEM (B, C*HW)  f32/bf16 -- lane index = c*HW + h*W + w
    scale_ref: VMEM (B, C)     f32      -- Dropout2d per-(sample, channel) scale
    w_ref    : SMEM (C*KH*KW,) f32      -- conv weights flattened (c, kh, kw)
    b_ref    : SMEM (1,)       f32
    o_ref    : VMEM (B, HW)    f32      -- full (H, W) slab per row; the VALID
                                           (H-1, W-1) window is sliced outside.
    """
    B = o_ref.shape[0]
    nchunks = B // _CHUNK

    def body(r, carry):
        r0 = pl.multiple_of(r * _CHUNK, _CHUNK)
        # Per-tap partial sums, reduced over channels first -> no rolls in the
        # channel loop.  4 live (CHUNK, HW) f32 accumulators = 16 vregs.
        a00 = jnp.zeros((_CHUNK, HW), jnp.float32)
        a01 = jnp.zeros((_CHUNK, HW), jnp.float32)
        a10 = jnp.zeros((_CHUNK, HW), jnp.float32)
        a11 = jnp.zeros((_CHUNK, HW), jnp.float32)
        for c in range(C):
            xc = x_ref[pl.ds(r0, _CHUNK), c * HW:(c + 1) * HW].astype(jnp.float32)
            # Fold Dropout2d in with one lane-broadcast multiply per channel.
            xc = xc * scale_ref[pl.ds(r0, _CHUNK), c:c + 1]
            wbase = c * KH * KW
            a00 = a00 + xc * w_ref[wbase + 0]
            a01 = a01 + xc * w_ref[wbase + 1]
            a10 = a10 + xc * w_ref[wbase + 2]
            a11 = a11 + xc * w_ref[wbase + 3]
        # Combine the four taps with only 3 XLU rolls (left shifts by 1, 1, W):
        #   out[i] = a00[i] + a01[i+1] + a10[i+W] + a11[i+W+1]
        # Wrapped lanes land only in the last image row / last column, which
        # the VALID conv window discards (requires KH == KW == 2).
        bot = a10 + pltpu.roll(a11, HW - 1, axis=1)
        out = a00 + pltpu.roll(a01, HW - 1, axis=1) + pltpu.roll(bot, HW - W, axis=1)
        o_ref[pl.ds(r0, _CHUNK), :] = out + b_ref[0]
        return carry

    lax.fori_loop(0, nchunks, body, 0, unroll=True if nchunks <= 8 else False)


def net_forward(x, weight, bias, drop_scale):
    """x: (N, C_IN, H, W) float32 or bfloat16,
    weight: (C_OUT, C_IN, KH, KW), bias: (C_OUT,),
    drop_scale: (N, C_IN) with values in {0, 1/(1-p)} (training) or all 1s (eval).
    Returns (N, C_OUT, H-1, W-1) float32."""
    N, C, H, W = x.shape
    assert C == C_IN
    assert KH == 2 and KW == 2, "roll-wraparound trick assumes a 2x2 kernel"
    HW = H * W
    assert HW % 128 == 0, "lane-dense layout assumes H*W is a multiple of 128"
    OH, OW = H - KH + 1, W - KW + 1

    # Batch-block heuristic: multiple of 16 (bf16 sublane tile / chunk size),
    # capped at _MAX_BLOCK, and an EVEN number of >=2 grid steps when N allows
    # so both v7x TensorCores get pipelined work.
    if N <= _CHUNK:
        B = _CHUNK
    else:
        steps = max(2, pl.cdiv(N, _MAX_BLOCK))
        steps += steps % 2
        B = _round_up(pl.cdiv(N, steps), _CHUNK)
    grid = (pl.cdiv(N, B),)   # ragged last block handled by Pallas; no jnp.pad

    x_flat = x.reshape(N, C * HW)                       # free reshape, dtype kept
    scale = drop_scale.astype(jnp.float32)              # (N, C), tiny
    w_flat = weight.reshape(-1).astype(jnp.float32)     # (C*KH*KW,)
    b_flat = bias.reshape(-1).astype(jnp.float32)       # (1,)

    kernel = functools.partial(_conv_dropout_kernel, C=C, W=W, HW=HW)

    out = pl.pallas_call(
        kernel,
        out_shape=jax.ShapeDtypeStruct((N, HW), jnp.float32),
        grid=grid,
        in_specs=[
            pl.BlockSpec((B, C * HW), lambda i: (i, 0)),           # images
            pl.BlockSpec((B, C), lambda i: (i, 0)),                # dropout scale
            pl.BlockSpec(memory_space=pltpu.MemorySpace.SMEM),     # weights
            pl.BlockSpec(memory_space=pltpu.MemorySpace.SMEM),     # bias
        ],
        out_specs=pl.BlockSpec((B, HW), lambda i: (i, 0)),
        compiler_params=pltpu.CompilerParams(
            dimension_semantics=("parallel",),
            vmem_limit_bytes=32 * 1024 * 1024),
    )(x_flat, scale, w_flat, b_flat)

    # TODO(synk): the [:OH, :OW] valid-window slice is a separate (small) XLA
    # copy; it is kept so the public output shape matches nn.Conv2d's VALID
    # output. Consumers that can tolerate the garbage last row/col could take
    # the (N, 1, H, W) slab directly.
    return out.reshape(N, 1, H, W)[:, :, :OH, :OW]


if __name__ == "__main__":
    key = jax.random.PRNGKey(0)
    k_x, k_w, k_b, k_drop = jax.random.split(key, 4)

    # Small deterministic example input: N=2, C=5, H=W=16 (NCHW).
    N, H, W = 2, 16, 16
    x = jax.random.normal(k_x, (N, C_IN, H, W), dtype=jnp.float32)

    # Deterministic parameter init (Conv2d(5, 1, 2) shapes), kaiming-ish scale.
    fan_in = C_IN * KH * KW
    bound = 1.0 / (fan_in ** 0.5)
    weight = jax.random.uniform(k_w, (C_OUT, C_IN, KH, KW),
                                dtype=jnp.float32, minval=-bound, maxval=bound)
    bias = jax.random.uniform(k_b, (C_OUT,), dtype=jnp.float32,
                              minval=-bound, maxval=bound)

    # Dropout2d(0.5) training-mode channel mask (per batch, per channel).
    # TODO(synk): cannot reproduce torch's RNG stream; mask drawn with jax.random.
    keep = jax.random.bernoulli(k_drop, 1.0 - P_DROP, (N, C_IN))
    drop_scale = keep.astype(jnp.float32) / (1.0 - P_DROP)

    # Feed bf16 input on v6e/v7x (halves input HBM traffic); f32 elsewhere.
    in_dtype = _pick_input_dtype()
    x_in = x.astype(in_dtype)

    fwd = jax.jit(net_forward)
    out = jax.block_until_ready(fwd(x_in, weight, bias, drop_scale))

    # Reference in plain JAX on the same (possibly bf16-quantized) input and
    # the same dropout mask, with f32-exact conv accumulation.
    x_q = x_in.astype(jnp.float32)
    x_dropped = x_q * drop_scale[:, :, None, None]
    ref = lax.conv_general_dilated(
        x_dropped, weight, window_strides=(1, 1), padding="VALID",
        dimension_numbers=("NCHW", "OIHW", "NCHW"),
        precision=lax.Precision.HIGHEST) + bias[None, :, None, None]

    assert out.shape == (N, C_OUT, H - 1, W - 1)
    assert jnp.allclose(out, ref, atol=1e-4, rtol=1e-4), \
        float(jnp.max(jnp.abs(out - ref)))

    print("KERNEL_OK")
</pallas_src>

<mosaic_0001>
module attributes {stable_mosaic.version = 11 : i64} {
  func.func @_conv_dropout_kernel(%arg0: i32, %arg1: memref<16x1280xf32, #tpu.memory_space<vmem>>, %arg2: memref<16x5xf32, #tpu.memory_space<vmem>>, %arg3: memref<20xf32, #tpu.memory_space<smem>>, %arg4: memref<1xf32, #tpu.memory_space<smem>>, %arg5: memref<16x256xf32, #tpu.memory_space<vmem>>) attributes {dimension_semantics = [#tpu.dimension_semantics<parallel>], iteration_bounds = array<i64: 1>, scalar_prefetch = 0 : i64, scratch_operands = 0 : i64, tpu.core_type = #tpu.core_type<tc>, window_params = [{transform_indices = @transform_0, window_bounds = array<i64: 16, 1280>}, {transform_indices = @transform_1, window_bounds = array<i64: 16, 5>}, {transform_indices = @transform_2, window_bounds = array<i64: 20>}, {transform_indices = @transform_3, window_bounds = array<i64: 1>}, {transform_indices = @transform_4, window_bounds = array<i64: 16, 256>}]} {
    %c0_i32 = arith.constant 0 : i32
    %c16_i32 = arith.constant 16 : i32
    %0 = arith.muli %c0_i32, %c16_i32 : i32
    %1 = tpu.assume_multiple %0, 16 : i32
    %cst = arith.constant 0.000000e+00 : f32
    %2 = vector.broadcast %cst : f32 to vector<16x256xf32>
    %cst_0 = arith.constant 0.000000e+00 : f32
    %3 = vector.broadcast %cst_0 : f32 to vector<16x256xf32>
    %cst_1 = arith.constant 0.000000e+00 : f32
    %4 = vector.broadcast %cst_1 : f32 to vector<16x256xf32>
    %cst_2 = arith.constant 0.000000e+00 : f32
    %5 = vector.broadcast %cst_2 : f32 to vector<16x256xf32>
    %6 = arith.index_cast %1 : i32 to index
    %c0 = arith.constant 0 : index
    %7 = vector.load %arg1[%6, %c0] : memref<16x1280xf32, #tpu.memory_space<vmem>>, vector<16x256xf32>
    %8 = arith.index_cast %1 : i32 to index
    %c0_3 = arith.constant 0 : index
    %9 = vector.load %arg2[%8, %c0_3] : memref<16x5xf32, #tpu.memory_space<vmem>>, vector<16x1xf32>
    %10 = vector.broadcast %9 : vector<16x1xf32> to vector<16x256xf32>
    %11 = arith.mulf %7, %10 : vector<16x256xf32>
    %c0_4 = arith.constant 0 : index
    %12 = memref.load %arg3[%c0_4] : memref<20xf32, #tpu.memory_space<smem>>
    %13 = vector.broadcast %12 : f32 to vector<16x256xf32>
    %14 = arith.mulf %11, %13 : vector<16x256xf32>
    %15 = arith.addf %2, %14 : vector<16x256xf32>
    %c1 = arith.constant 1 : index
    %16 = memref.load %arg3[%c1] : memref<20xf32, #tpu.memory_space<smem>>
    %17 = vector.broadcast %16 : f32 to vector<16x256xf32>
    %18 = arith.mulf %11, %17 : vector<16x256xf32>
    %19 = arith.addf %3, %18 : vector<16x256xf32>
    %c2 = arith.constant 2 : index
    %20 = memref.load %arg3[%c2] : memref<20xf32, #tpu.memory_space<smem>>
    %21 = vector.broadcast %20 : f32 to vector<16x256xf32>
    %22 = arith.mulf %11, %21 : vector<16x256xf32>
    %23 = arith.addf %4, %22 : vector<16x256xf32>
    %c3 = arith.constant 3 : index
    %24 = memref.load %arg3[%c3] : memref<20xf32, #tpu.memory_space<smem>>
    %25 = vector.broadcast %24 : f32 to vector<16x256xf32>
    %26 = arith.mulf %11, %25 : vector<16x256xf32>
    %27 = arith.addf %5, %26 : vector<16x256xf32>
    %28 = arith.index_cast %1 : i32 to index
    %c256 = arith.constant 256 : index
    %29 = vector.load %arg1[%28, %c256] : memref<16x1280xf32, #tpu.memory_space<vmem>>, vector<16x256xf32>
    %30 = arith.index_cast %1 : i32 to index
    %c1_5 = arith.constant 1 : index
    %31 = vector.load %arg2[%30, %c1_5] : memref<16x5xf32, #tpu.memory_space<vmem>>, vector<16x1xf32>
    %32 = vector.broadcast %31 : vector<16x1xf32> to vector<16x256xf32>
    %33 = arith.mulf %29, %32 : vector<16x256xf32>
    %c4 = arith.constant 4 : index
    %34 = memref.load %arg3[%c4] : memref<20xf32, #tpu.memory_space<smem>>
    %35 = vector.broadcast %34 : f32 to vector<16x256xf32>
    %36 = arith.mulf %33, %35 : vector<16x256xf32>
    %37 = arith.addf %15, %36 : vector<16x256xf32>
    %c5 = arith.constant 5 : index
    %38 = memref.load %arg3[%c5] : memref<20xf32, #tpu.memory_space<smem>>
    %39 = vector.broadcast %38 : f32 to vector<16x256xf32>
    %40 = arith.mulf %33, %39 : vector<16x256xf32>
    %41 = arith.addf %19, %40 : vector<16x256xf32>
    %c6 = arith.constant 6 : index
    %42 = memref.load %arg3[%c6] : memref<20xf32, #tpu.memory_space<smem>>
    %43 = vector.broadcast %42 : f32 to vector<16x256xf32>
    %44 = arith.mulf %33, %43 : vector<16x256xf32>
    %45 = arith.addf %23, %44 : vector<16x256xf32>
    %c7 = arith.constant 7 : index
    %46 = memref.load %arg3[%c7] : memref<20xf32, #tpu.memory_space<smem>>
    %47 = vector.broadcast %46 : f32 to vector<16x256xf32>
    %48 = arith.mulf %33, %47 : vector<16x256xf32>
    %49 = arith.addf %27, %48 : vector<16x256xf32>
    %50 = arith.index_cast %1 : i32 to index
    %c512 = arith.constant 512 : index
    %51 = vector.load %arg1[%50, %c512] : memref<16x1280xf32, #tpu.memory_space<vmem>>, vector<16x256xf32>
    %52 = arith.index_cast %1 : i32 to index
    %c2_6 = arith.constant 2 : index
    %53 = vector.load %arg2[%52, %c2_6] : memref<16x5xf32, #tpu.memory_space<vmem>>, vector<16x1xf32>
    %54 = vector.broadcast %53 : vector<16x1xf32> to vector<16x256xf32>
    %55 = arith.mulf %51, %54 : vector<16x256xf32>
    %c8 = arith.constant 8 : index
    %56 = memref.load %arg3[%c8] : memref<20xf32, #tpu.memory_space<smem>>
    %57 = vector.broadcast %56 : f32 to vector<16x256xf32>
    %58 = arith.mulf %55, %57 : vector<16x256xf32>
    %59 = arith.addf %37, %58 : vector<16x256xf32>
    %c9 = arith.constant 9 : index
    %60 = memref.load %arg3[%c9] : memref<20xf32, #tpu.memory_space<smem>>
    %61 = vector.broadcast %60 : f32 to vector<16x256xf32>
    %62 = arith.mulf %55, %61 : vector<16x256xf32>
    %63 = arith.addf %41, %62 : vector<16x256xf32>
    %c10 = arith.constant 10 : index
    %64 = memref.load %arg3[%c10] : memref<20xf32, #tpu.memory_space<smem>>
    %65 = vector.broadcast %64 : f32 to vector<16x256xf32>
    %66 = arith.mulf %55, %65 : vector<16x256xf32>
    %67 = arith.addf %45, %66 : vector<16x256xf32>
    %c11 = arith.constant 11 : index
    %68 = memref.load %arg3[%c11] : memref<20xf32, #tpu.memory_space<smem>>
    %69 = vector.broadcast %68 : f32 to vector<16x256xf32>
    %70 = arith.mulf %55, %69 : vector<16x256xf32>
    %71 = arith.addf %49, %70 : vector<16x256xf32>
    %72 = arith.index_cast %1 : i32 to index
    %c768 = arith.constant 768 : index
    %73 = vector.load %arg1[%72, %c768] : memref<16x1280xf32, #tpu.memory_space<vmem>>, vector<16x256xf32>
    %74 = arith.index_cast %1 : i32 to index
    %c3_7 = arith.constant 3 : index
    %75 = vector.load %arg2[%74, %c3_7] : memref<16x5xf32, #tpu.memory_space<vmem>>, vector<16x1xf32>
    %76 = vector.broadcast %75 : vector<16x1xf32> to vector<16x256xf32>
    %77 = arith.mulf %73, %76 : vector<16x256xf32>
    %c12 = arith.constant 12 : index
    %78 = memref.load %arg3[%c12] : memref<20xf32, #tpu.memory_space<smem>>
    %79 = vector.broadcast %78 : f32 to vector<16x256xf32>
    %80 = arith.mulf %77, %79 : vector<16x256xf32>
    %81 = arith.addf %59, %80 : vector<16x256xf32>
    %c13 = arith.constant 13 : index
    %82 = memref.load %arg3[%c13] : memref<20xf32, #tpu.memory_space<smem>>
    %83 = vector.broadcast %82 : f32 to vector<16x256xf32>
    %84 = arith.mulf %77, %83 : vector<16x256xf32>
    %85 = arith.addf %63, %84 : vector<16x256xf32>
    %c14 = arith.constant 14 : index
    %86 = memref.load %arg3[%c14] : memref<20xf32, #tpu.memory_space<smem>>
    %87 = vector.broadcast %86 : f32 to vector<16x256xf32>
    %88 = arith.mulf %77, %87 : vector<16x256xf32>
    %89 = arith.addf %67, %88 : vector<16x256xf32>
    %c15 = arith.constant 15 : index
    %90 = memref.load %arg3[%c15] : memref<20xf32, #tpu.memory_space<smem>>
    %91 = vector.broadcast %90 : f32 to vector<16x256xf32>
    %92 = arith.mulf %77, %91 : vector<16x256xf32>
    %93 = arith.addf %71, %92 : vector<16x256xf32>
    %94 = arith.index_cast %1 : i32 to index
    %c1024 = arith.constant 1024 : index
    %95 = vector.load %arg1[%94, %c1024] : memref<16x1280xf32, #tpu.memory_space<vmem>>, vector<16x256xf32>
    %96 = arith.index_cast %1 : i32 to index
    %c4_8 = arith.constant 4 : index
    %97 = vector.load %arg2[%96, %c4_8] : memref<16x5xf32, #tpu.memory_space<vmem>>, vector<16x1xf32>
    %98 = vector.broadcast %97 : vector<16x1xf32> to vector<16x256xf32>
    %99 = arith.mulf %95, %98 : vector<16x256xf32>
    %c16 = arith.constant 16 : index
    %100 = memref.load %arg3[%c16] : memref<20xf32, #tpu.memory_space<smem>>
    %101 = vector.broadcast %100 : f32 to vector<16x256xf32>
    %102 = arith.mulf %99, %101 : vector<16x256xf32>
    %103 = arith.addf %81, %102 : vector<16x256xf32>
    %c17 = arith.constant 17 : index
    %104 = memref.load %arg3[%c17] : memref<20xf32, #tpu.memory_space<smem>>
    %105 = vector.broadcast %104 : f32 to vector<16x256xf32>
    %106 = arith.mulf %99, %105 : vector<16x256xf32>
    %107 = arith.addf %85, %106 : vector<16x256xf32>
    %c18 = arith.constant 18 : index
    %108 = memref.load %arg3[%c18] : memref<20xf32, #tpu.memory_space<smem>>
    %109 = vector.broadcast %108 : f32 to vector<16x256xf32>
    %110 = arith.mulf %99, %109 : vector<16x256xf32>
    %111 = arith.addf %89, %110 : vector<16x256xf32>
    %c19 = arith.constant 19 : index
    %112 = memref.load %arg3[%c19] : memref<20xf32, #tpu.memory_space<smem>>
    %113 = vector.broadcast %112 : f32 to vector<16x256xf32>
    %114 = arith.mulf %99, %113 : vector<16x256xf32>
    %115 = arith.addf %93, %114 : vector<16x256xf32>
    %c255_i32 = arith.constant 255 : i32
    %116 = tpu.dynamic_rotate %115 by %c255_i32 dim 1 : vector<16x256xf32>, i32 -> vector<16x256xf32>
    %117 = arith.addf %111, %116 : vector<16x256xf32>
    %c255_i32_9 = arith.constant 255 : i32
    %118 = tpu.dynamic_rotate %107 by %c255_i32_9 dim 1 : vector<16x256xf32>, i32 -> vector<16x256xf32>
    %119 = arith.addf %103, %118 : vector<16x256xf32>
    %c240_i32 = arith.constant 240 : i32
    %120 = tpu.dynamic_rotate %117 by %c240_i32 dim 1 : vector<16x256xf32>, i32 -> vector<16x256xf32>
    %121 = arith.addf %119, %120 : vector<16x256xf32>
    %c0_10 = arith.constant 0 : index
    %122 = memref.load %arg4[%c0_10] : memref<1xf32, #tpu.memory_space<smem>>
    %123 = vector.broadcast %122 : f32 to vector<16x256xf32>
    %124 = arith.addf %121, %123 : vector<16x256xf32>
    %125 = arith.index_cast %1 : i32 to index
    %c0_11 = arith.constant 0 : index
    %126 = vector.load %arg5[%125, %c0_11] : memref<16x256xf32, #tpu.memory_space<vmem>>, vector<16x256xf32>
    tpu.vector_store %arg5[%125, %c0_11], %124 {strides = array<i32>} : memref<16x256xf32, #tpu.memory_space<vmem>>, vector<16x256xf32>,
    %c1_i32 = arith.constant 1 : i32
    return
  }
  func.func @transform_0(%arg0: i32) -> (i32, i32) {
    %c0_i32 = arith.constant 0 : i32
    %c0_i32_0 = arith.constant 0 : i32
    return %arg0, %c0_i32 : i32, i32
  }
  func.func @transform_1(%arg0: i32) -> (i32, i32) {
    %c0_i32 = arith.constant 0 : i32
    %c0_i32_0 = arith.constant 0 : i32
    return %arg0, %c0_i32 : i32, i32
  }
  func.func @transform_2(%arg0: i32) -> i32 {
    %c0_i32 = arith.constant 0 : i32
    %c0_i32_0 = arith.constant 0 : i32
    return %c0_i32 : i32
  }
  func.func @transform_3(%arg0: i32) -> i32 {
    %c0_i32 = arith.constant 0 : i32
    %c0_i32_0 = arith.constant 0 : i32
    return %c0_i32 : i32
  }
  func.func @transform_4(%arg0: i32) -> (i32, i32) {
    %c0_i32 = arith.constant 0 : i32
    %c0_i32_0 = arith.constant 0 : i32
    return %arg0, %c0_i32 : i32, i32
  }
}

</mosaic_0001>

<bundles_post_ra>
// kernel: net_forward.1
= control target key start
LH: loop header
LB: loop body
LE: loop exit
PB: predicated region body
PF: predicated region fallthrough
CT: control target
= control target key end

     0   :  { %10 = vsyncpa [#allocation4], 0  ;;  %s2087_s0 = inlined_call_operand.vmem [shape: f32[2,1280], index: 0, kind: input, shape index: {}]   ;;  %s2088_s1 = inlined_call_operand.vmem [shape: f32[2,5], index: 1, kind: input, shape index: {}]   ;;  %s2089_s2 = inlined_call_operand.vmem [shape: f32[20], index: 2, kind: input, shape index: {}]   ;;  %s2090_s3 = inlined_call_operand.<no memory space> [shape: f32[1], index: 3, kind: input, shape index: {}]   ;;  %s2091_s4 = inlined_call_operand.vmem [shape: f32[2,256], index: 4, kind: output, shape index: {}]  }
   0x1   :  { %s21_s17 = sshll.u32 %s2089_s2, 4  ;;  %s22_s17 = int_to_ptr.vmem [resolvable:$true] %s21_s17 }
   0x2   :  { %s1283_s18 = scalar_lea.vmem %s22_s17, 16  ;;  %p1288_p1 = scmp.lt.s32.totalorder %s22_s17, %s22_s17 }
   0x3   :  { %p1284_p0 = scmp.ne.s32.totalorder %s22_s17, %s1283_s18  ;;  %p1289_p2 = scmp.lt.s32.totalorder %s1283_s18, %s1283_s18 }
   0x5   :  { %p1290_p3 = por %p1289_p2, %p1288_p1 }
   0x7   :  { %p1291_p4 = pnand %p1290_p3, %p1284_p0 }
   0x9   :  { %1294 = shalt.err (!%p1291_p4)
}
   0xa   :  { %s1297_s19 = smov [#allocation3]  }
   0xb   :  { %24 = dma.vmem_to_smem %s22_s17, 16, %s1297_s19, [#allocation4]  }
   0xc   :  { %1295 = dma.done.wait [#allocation4], 16  }
   0xd   :  { %1296 = vsyncadd [#allocation4], 4294967280 }
   0xe   :  { %30 = sfence }
   0xf   :  { %v42_v0 = vld [vmem:[%s2088_s1] sm:$0xff]  ;;  %v1298_v1 = vmov 2   ;;  %v1299_v2 = vmov 0   ;;  %v1300_v3 = vmov 3   ;;  %v1301_v4 = vmov 1   ;;  %v43_v5 = vld [vmem:[%s2088_s1 + $0x8] sm:$0xff] }
  0x10   :  { %1275 = vset.pattern.permute.xlu1 %v1298_v1  ;;  %1273 = vset.pattern.permute.xlu0 %v1299_v2  ;;  %v1302_v6 = vmov 4   ;;  %s1344_s23 = sld [smem:[#allocation3 + $0x8]]  ;;  %s1346_s24 = sld [smem:[#allocation3 + $0x9]]  ;;  %v1303_v7 = vmov 269488144   ;;  %v2092_v9 = vlaneseq }
  0x11   :  { %363 = vperm.xlu1 %1275, %v42_v0   ;;  %46 = vperm.xlu0 %1273, %v42_v0   ;;  %s1348_s25 = sld [smem:[#allocation3 + $0xa]]  ;;  %s1350_s1 = sld [smem:[#allocation3 + $0xb]]  ;;  %v53_v8 = vunpack.c.l.s4 %v1303_v7  ;;  %v1304_v10 = vmov 842150450   ;;  %v1305_v12 = vmov 1414812756  }
  0x12   :  { %s1352_s26 = sld [smem:[#allocation3]]  ;;  %v60_v11 = vunpack.c.l.s4 %v1304_v10  ;;  %s1354_s27 = sld [smem:[#allocation3 + $0x1]]  ;;  %v67_v13 = vunpack.c.l.s4 %v1305_v12  ;;  %v1306_v14 = vmov 1987475062   ;;  %v1307_v16 = vmov 1983009808  }
  0x13   :  { %s1356_s28 = sld [smem:[#allocation3 + $0x2]]  ;;  %v74_v15 = vunpack.c.l.s4 %v1306_v14  ;;  %s1358_s29 = sld [smem:[#allocation3 + $0x3]]  ;;  %v839_v17 = vunpack.c.l.s4 %v1307_v16  ;;  %v54_v18 = vunpack.c.0.s8 %v53_v8  ;;  %v56_v19 = vshrl.u32 %v2092_v9, 7  ;;  %v354_v34 = vld [vmem:[%s2087_s0 + $0x8] sm:$0xf] }
  0x14   :  { %s1360_s30 = sld [smem:[#allocation3 + $0x4]]  ;;  %s1362_s5 = sld [smem:[#allocation3 + $0x5]]  ;;  %v61_v20 = vunpack.c.0.s8 %v60_v11  ;;  %v68_v21 = vunpack.c.0.s8 %v67_v13  ;;  %v355_v35 = vld [vmem:[%s2087_s0 + $0x1c] sm:$0xf]  ;;  %v356_v36 = vld [vmem:[%s2087_s0 + $0x30] sm:$0xf] }
  0x15   :  { %1276 = vset.pattern.permute.xlu1 %v1300_v3  ;;  %1274 = vset.pattern.permute.xlu0 %v1301_v4  ;;  %s1364_s6 = sld [smem:[#allocation3 + $0x6]]  ;;  %s1366_s7 = sld [smem:[#allocation3 + $0x7]]  ;;  %v75_v22 = vunpack.c.0.s8 %v74_v15  ;;  %v840_v23 = vunpack.c.0.s8 %v839_v17  ;;  %v1375_v24 = vsub.s32 %v54_v18, %v56_v19  ;;  %v357_v37 = vld [vmem:[%s2087_s0 + $0x44] sm:$0xf]  ;;  %v34_v42 = vld [vmem:[%s2087_s0] sm:$0xf] }
  0x16   :  { %521 = vperm.xlu1 %1276, %v42_v0   ;;  %205 = vperm.xlu0 %1274, %v42_v0   ;;  %s1368_s8 = sld [smem:[#allocation3 + $0xf]]  ;;  %s1371_s9 = sld [smem:[#allocation3 + $0x13]]  ;;  %v1377_v25 = vsub.s32 %v61_v20, %v56_v19  ;;  %v1379_v26 = vsub.s32 %v68_v21, %v56_v19  ;;  %v1385_v29 = vstv %s1346_s24  ;;  %v35_v57 = vld [vmem:[%s2087_s0 + $0x14] sm:$0xf]  ;;  %v36_v58 = vld [vmem:[%s2087_s0 + $0x28] sm:$0xf] }
  0x17   :  { %s1373_s10 = sld [smem:[#allocation3 + $0xd]]  ;;  %s1257_s11 = sld [smem:[#allocation3 + $0x11]]  ;;  %v1381_v27 = vsub.s32 %v75_v22, %v56_v19  ;;  %v1388_v30 = vstv %s1348_s25  ;;  %v1391_v31 = vstv %s1350_s1  ;;  %v1393_v32 = vsub.s32 %v840_v23, %v56_v19  ;;  %v37_v59 = vld [vmem:[%s2087_s0 + $0x3c] sm:$0xf] }
  0x18   :  { %s1254_s12 = sld [smem:[#allocation3 + $0xe]]  ;;  %2103 = vst [vmem:[#allocation7_spill] sm:$0xff] %v1388_v30  ;;  %v125_v33 = vstv %s1352_s26  ;;  %v1409_v38 = vstv %s1354_s27  ;;  %s1898_s13 = sld [smem:[#allocation3 + $0xc]] }
  0x19   :  { %v1412_v39 = vstv %s1356_s28  ;;  %v1415_v40 = vstv %s1358_s29  ;;  %s1308_s14 = smov 127   ;;  %s1944_s15 = sld [smem:[#allocation3 + $0x10]] }
  0x1a   :  { %1277 = vset.pattern.permute.xlu1 %v1299_v2  ;;  %208 = vperm.xlu0 %1274, %v43_v5   ;;  %v1422_v43 = vstv %s1362_s5 }
  0x1b   :  { %50 = vperm.xlu1 %1277, %v43_v5   ;;  %v1425_v44 = vstv %s1364_s6  ;;  %v1428_v45 = vstv %s1366_s7 }
  0x1c   :  { %v1431_v46 = vstv %s1368_s8  ;;  %v1434_v48 = vstv %s1371_s9 }
  0x1d   :  { %v1437_v49 = vstv %s1373_s10  ;;  %v1439_v50 = vstv %s1257_s11 }
  0x1e   :  { %1279 = vset.pattern.permute.xlu0 %v1298_v1  ;;  %2104 = vst [vmem:[#allocation8_spill] sm:$0xff] %v1437_v49  ;;  %2105 = vst [vmem:[#allocation9_spill] sm:$0xff] %v1439_v50  ;;  %v1441_v51 = vstv %s1254_s12 }
  0x1f   :  { %1278 = vset.pattern.permute.xlu1 %v1302_v6  ;;  %366 = vperm.xlu0 %1279, %v43_v5   ;;  %2106 = vst [vmem:[#allocation10_spill] sm:$0xff] %v1441_v51 }
  0x20   :  { %679 = vperm.xlu1 %1278, %v42_v0  }
  0x23   :  { %1282 = vset.pattern.permute.xlu0 %v1302_v6 }
  0x24   :  { %1280 = vset.pattern.permute.xlu1 %v1300_v3 }
  0x25   :  { %524 = vperm.xlu1 %1280, %v43_v5  }
  0x29   :  { %1281 = vset.pattern.permute.xlu1 %v1302_v6 }
  0x2a   :  { %682 = vperm.xlu1 %1281, %v43_v5  }
  0x90   :  { %v364_v47 = vpop.permute.xlu1 %363  ;;  %v47_v56 = vpop.permute.xlu0 %46 }
  0x91   :  { %v374_v52 = vrot.slane %v364_v47, %v1375_v24  ;;  %v381_v53 = vrot.slane %v364_v47, %v1377_v25  ;;  %v388_v54 = vrot.slane %v364_v47, %v1379_v26  ;;  %v395_v55 = vrot.slane %v364_v47, %v1381_v27  ;;  %v513_v47 = vld [vmem:[%s2087_s0 + $0x20] sm:$0xf] }
  0x92   :  { %v58_v60 = vrot.slane %v47_v56, %v1375_v24  ;;  %v65_v61 = vrot.slane %v47_v56, %v1377_v25  ;;  %v72_v62 = vrot.slane %v47_v56, %v1379_v26  ;;  %v79_v63 = vrot.slane %v47_v56, %v1381_v27 }
  0x93   :  { %v1460_v0 = vmul.f32 %v374_v52, %v354_v34  ;;  %v433_v1 = vmul.f32 %v381_v53, %v355_v35  ;;  %v1462_v2 = vmul.f32 %v388_v54, %v356_v36  ;;  %v435_v3 = vmul.f32 %v395_v55, %v357_v37 }
  0x94   :  { %v116_v4 = vmul.f32 %v58_v60, %v34_v42  ;;  %v117_v5 = vmul.f32 %v65_v61, %v35_v57  ;;  %v118_v6 = vmul.f32 %v72_v62, %v36_v58  ;;  %v119_v7 = vmul.f32 %v79_v63, %v37_v59  ;;  %v512_v42 = vld [vmem:[%s2087_s0 + $0xc] sm:$0xf]  ;;  %v514_v57 = vld [vmem:[%s2087_s0 + $0x34] sm:$0xf]  ;;  %v515_v58 = vld [vmem:[%s2087_s0 + $0x48] sm:$0xf] }
  0x95   :  { %2107 = vst [vmem:[#allocation11_spill] sm:$0xff] %v1460_v0  ;;  %2108 = vst [vmem:[#allocation12_spill] sm:$0xff] %v1462_v2  ;;  %v1466_v8 = vmul.f32 %v1385_v29, %v1460_v0  ;;  %v1469_v10 = vmul.f32 %v1385_v29, %v433_v1  ;;  %v1473_v11 = vmul.f32 %v1385_v29, %v1462_v2  ;;  %v522_v19 = vpop.permute.xlu1 %521  ;;  %v206_v52 = vpop.permute.xlu0 %205  ;;  %v196_v59 = vld [vmem:[%s2087_s0 + $0x4] sm:$0xf] }
  0x96   :  { %v1476_v12 = vmul.f32 %v1385_v29, %v435_v3  ;;  %v1479_v13 = vmul.f32 %v1388_v30, %v433_v1  ;;  %v1482_v14 = vmul.f32 %v1388_v30, %v435_v3  ;;  %v1486_v15 = vmul.f32 %v1391_v31, %v1460_v0 }
  0x97   :  { %2109 = vst [vmem:[#allocation13_spill] sm:$0xff] %v1466_v8  ;;  %2110 = vst [vmem:[#allocation14_spill] sm:$0xff] %v1469_v10  ;;  %v1489_v16 = vmul.f32 %v1391_v31, %v433_v1  ;;  %v1493_v17 = vmul.f32 %v1391_v31, %v1462_v2  ;;  %v1496_v18 = vmul.f32 %v1391_v31, %v435_v3  ;;  %v197_v1 = vld [vmem:[%s2087_s0 + $0x18] sm:$0xf]  ;;  %v198_v3 = vld [vmem:[%s2087_s0 + $0x2c] sm:$0xf] }
  0x98   :  { %2111 = vst [vmem:[#allocation15_spill] sm:$0xff] %v1473_v11  ;;  %2112 = vst [vmem:[#allocation16_spill] sm:$0xff] %v1476_v12  ;;  %v1498_v20 = vmul.f32 %v125_v33, %v116_v4  ;;  %v1501_v21 = vmul.f32 %v1409_v38, %v116_v4  ;;  %v1504_v22 = vmul.f32 %v1409_v38, %v117_v5 }
  0x99   :  { %2113 = vst [vmem:[#allocation17_spill] sm:$0xff] %v1479_v13  ;;  %2114 = vst [vmem:[#allocation18_spill] sm:$0xff] %v1482_v14  ;;  %v1507_v23 = vmul.f32 %v1409_v38, %v118_v6  ;;  %v1510_v34 = vmul.f32 %v1409_v38, %v119_v7  ;;  %v1513_v35 = vmul.f32 %v1412_v39, %v116_v4 }
  0x9a   :  { %2115 = vst [vmem:[#allocation19_spill] sm:$0xff] %v1498_v20  ;;  %2116 = vst [vmem:[#allocation20_spill] sm:$0xff] %v1504_v22  ;;  %v1516_v36 = vmul.f32 %v1412_v39, %v117_v5  ;;  %v1519_v33 = vmul.f32 %v1412_v39, %v118_v6  ;;  %v1522_v37 = vmul.f32 %v1412_v39, %v119_v7  ;;  %v51_v9 = vpop.permute.xlu1 %50 }
  0x9b   :  { %2117 = vst [vmem:[#allocation21_spill] sm:$0xff] %v1507_v23  ;;  %2118 = vst [vmem:[#allocation22_spill] sm:$0xff] %v1510_v34  ;;  %v1531_v53 = vmul.f32 %v1415_v40, %v116_v4  ;;  %v1534_v54 = vmul.f32 %v1415_v40, %v117_v5  ;;  %v1537_v55 = vmul.f32 %v1415_v40, %v118_v6  ;;  %v199_v4 = vld [vmem:[%s2087_s0 + $0x40] sm:$0xf] }
  0x9c   :  { %2119 = vst [vmem:[#allocation23_spill] sm:$0xff] %v1513_v35  ;;  %2120 = vst [vmem:[#allocation24_spill] sm:$0xff] %v1516_v36  ;;  %v1540_v56 = vmul.f32 %v1415_v40, %v119_v7  ;;  %v532_v60 = vrot.slane %v522_v19, %v1375_v24  ;;  %v539_v61 = vrot.slane %v522_v19, %v1377_v25 }
  0x9d   :  { %2121 = vst [vmem:[#allocation25_spill] sm:$0xff] %v1519_v33  ;;  %2122 = vst [vmem:[#allocation26_spill] sm:$0xff] %v1522_v37  ;;  %v546_v62 = vrot.slane %v522_v19, %v1379_v26  ;;  %v553_v63 = vrot.slane %v522_v19, %v1381_v27  ;;  %v216_v5 = vrot.slane %v206_v52, %v1375_v24 }
  0x9e   :  { %v223_v6 = vrot.slane %v206_v52, %v1377_v25  ;;  %v230_v7 = vrot.slane %v206_v52, %v1379_v26  ;;  %v237_v19 = vrot.slane %v206_v52, %v1381_v27  ;;  %v1568_v28 = vmul.f32 %v532_v60, %v512_v42 }
  0x9f   :  { %v1570_v41 = vmul.f32 %v539_v61, %v513_v47  ;;  %v1572_v20 = vmul.f32 %v546_v62, %v514_v57  ;;  %v1574_v35 = vmul.f32 %v553_v63, %v515_v58  ;;  %v274_v51 = vmul.f32 %v216_v5, %v196_v59  ;;  %v38_v47 = vld [vmem:[%s2087_s0 + $0x50] sm:$0xf]  ;;  %v40_v62 = vld [vmem:[%s2087_s0 + $0x78] sm:$0xf]  ;;  %v41_v63 = vld [vmem:[%s2087_s0 + $0x8c] sm:$0xf] }
  0xa0   :  { %v275_v14 = vmul.f32 %v223_v6, %v197_v1  ;;  %v276_v13 = vmul.f32 %v230_v7, %v198_v3  ;;  %v277_v2 = vmul.f32 %v237_v19, %v199_v4  ;;  %v86_v0 = vrot.slane %v51_v9, %v1375_v24  ;;  %v209_v6 = vpop.permute.xlu0 %208 }
  0xa1   :  { %v93_v37 = vrot.slane %v51_v9, %v1377_v25  ;;  %v100_v33 = vrot.slane %v51_v9, %v1379_v26  ;;  %v107_v52 = vrot.slane %v51_v9, %v1381_v27  ;;  %v2123_v42 = vstv %s1360_s30  ;;  %v39_v9 = vld [vmem:[%s2087_s0 + $0x64] sm:$0xf] }
  0xa2   :  { %v1582_v60 = vmul.f32 %v2123_v42, %v274_v51  ;;  %v1588_v57 = vmul.f32 %v1422_v43, %v274_v51  ;;  %v1591_v58 = vmul.f32 %v1422_v43, %v275_v14  ;;  %v1594_v59 = vmul.f32 %v1422_v43, %v276_v13 }
  0xa3   :  { %v1597_v61 = vmul.f32 %v1422_v43, %v277_v2  ;;  %v1609_v1 = vmul.f32 %v1425_v44, %v274_v51  ;;  %v1612_v3 = vmul.f32 %v1425_v44, %v275_v14  ;;  %v1615_v4 = vmul.f32 %v1425_v44, %v276_v13 }
  0xa4   :  { %2124 = vst [vmem:[#allocation27_spill] sm:$0xff] %v1582_v60  ;;  %2125 = vst [vmem:[#allocation28_spill] sm:$0xff] %v1588_v57  ;;  %v1618_v5 = vmul.f32 %v1425_v44, %v277_v2  ;;  %v1621_v7 = vmul.f32 %v1428_v45, %v274_v51  ;;  %v1624_v19 = vmul.f32 %v1428_v45, %v275_v14 }
  0xa5   :  { %2126 = vst [vmem:[#allocation29_spill] sm:$0xff] %v1591_v58  ;;  %2127 = vst [vmem:[#allocation30_spill] sm:$0xff] %v1594_v59  ;;  %v1627_v42 = vmul.f32 %v1428_v45, %v276_v13  ;;  %v1630_v60 = vmul.f32 %v1428_v45, %v277_v2  ;;  %v122_v36 = vmul.f32 %v100_v33, %v40_v62  ;;  %v200_v13 = vld [vmem:[%s2087_s0 + $0x54] sm:$0xf] }
  0xa6   :  { %2128 = vst [vmem:[#allocation31_spill] sm:$0xff] %v1597_v61  ;;  %2129 = vst [vmem:[#allocation32_spill] sm:$0xff] %v1609_v1  ;;  %v120_v1 = vmul.f32 %v86_v0, %v38_v47  ;;  %v244_v50 = vrot.slane %v209_v6, %v1375_v24  ;;  %v258_v51 = vrot.slane %v209_v6, %v1379_v26  ;;  %v203_v47 = vld [vmem:[%s2087_s0 + $0x90] sm:$0xf] }
  0xa7   :  { %2130 = vst [vmem:[#allocation33_spill] sm:$0xff] %v1612_v3  ;;  %2131 = vst [vmem:[#allocation34_spill] sm:$0xff] %v1615_v4  ;;  %v121_v3 = vmul.f32 %v93_v37, %v39_v9  ;;  %v123_v4 = vmul.f32 %v107_v52, %v41_v63  ;;  %v265_v12 = vrot.slane %v209_v6, %v1381_v27  ;;  %v201_v37 = vld [vmem:[%s2087_s0 + $0x68] sm:$0xf]  ;;  %v202_v52 = vld [vmem:[%s2087_s0 + $0x7c] sm:$0xf] }
  0xa8   :  { %2132 = vst [vmem:[#allocation35_spill] sm:$0xff] %v1618_v5  ;;  %v251_v5 = vrot.slane %v209_v6, %v1377_v25  ;;  %v1640_v14 = vmul.f32 %v1409_v38, %v120_v1  ;;  %v1646_v2 = vmul.f32 %v1409_v38, %v122_v36  ;;  %v1661_v9 = vmul.f32 %v1412_v39, %v120_v1  ;;  %v367_v6 = vpop.permute.xlu0 %366 }
  0xa9   :  { %v1643_v0 = vmul.f32 %v1409_v38, %v121_v3  ;;  %v1649_v33 = vmul.f32 %v1409_v38, %v123_v4  ;;  %v1664_v62 = vmul.f32 %v1412_v39, %v121_v3  ;;  %v1667_v38 = vmul.f32 %v1412_v39, %v122_v36 }
  0xaa   :  { %2133 = vst [vmem:[#allocation36_spill] sm:$0xff] %v1640_v14  ;;  %2135 = vst [vmem:[#allocation38_spill] sm:$0xff] %v1646_v2  ;;  %v1670_v63 = vmul.f32 %v1412_v39, %v123_v4  ;;  %v1673_v2 = vmul.f32 %v1415_v40, %v120_v1  ;;  %v1679_v14 = vmul.f32 %v1415_v40, %v122_v36  ;;  %v358_v36 = vld [vmem:[%s2087_s0 + $0x58] sm:$0xf] }
  0xab   :  { %2134 = vst [vmem:[#allocation37_spill] sm:$0xff] %v1643_v0  ;;  %2136 = vst [vmem:[#allocation39_spill] sm:$0xff] %v1649_v33  ;;  %v680_v33 = vpop.permute.xlu1 %679  ;;  %v1676_v0 = vmul.f32 %v1415_v40, %v121_v3  ;;  %v279_v11 = vmul.f32 %v251_v5, %v201_v37  ;;  %v281_v49 = vmul.f32 %v265_v12, %v203_v47  ;;  %v360_v5 = vld [vmem:[%s2087_s0 + $0x80] sm:$0xf] }
  0xac   :  { %2137 = vst [vmem:[#allocation40_spill] sm:$0xff] %v1661_v9  ;;  %2138 = vst [vmem:[#allocation41_spill] sm:$0xff] %v1664_v62  ;;  %v1682_v9 = vmul.f32 %v1415_v40, %v123_v4  ;;  %v278_v62 = vmul.f32 %v244_v50, %v200_v13  ;;  %v402_v39 = vrot.slane %v367_v6, %v1375_v24  ;;  %v359_v4 = vld [vmem:[%s2087_s0 + $0x6c] sm:$0xf] }
  0xad   :  { %2139 = vst [vmem:[#allocation42_spill] sm:$0xff] %v1667_v38  ;;  %2140 = vst [vmem:[#allocation43_spill] sm:$0xff] %v1670_v63  ;;  %v280_v38 = vmul.f32 %v258_v51, %v202_v52  ;;  %v409_v63 = vrot.slane %v367_v6, %v1377_v25  ;;  %v416_v1 = vrot.slane %v367_v6, %v1379_v26  ;;  %v361_v51 = vld [vmem:[%s2087_s0 + $0x94] sm:$0xf] }
  0xae   :  { %v423_v10 = vrot.slane %v367_v6, %v1381_v27  ;;  %v1692_v3 = vmul.f32 %v1422_v43, %v278_v62  ;;  %v1695_v40 = vmul.f32 %v1422_v43, %v279_v11  ;;  %v1701_v12 = vmul.f32 %v1422_v43, %v281_v49 }
  0xaf   :  { %v1698_v50 = vmul.f32 %v1422_v43, %v280_v38  ;;  %v1713_v13 = vmul.f32 %v1425_v44, %v278_v62  ;;  %v1716_v37 = vmul.f32 %v1425_v44, %v279_v11  ;;  %v1719_v43 = vmul.f32 %v1425_v44, %v280_v38  ;;  %v525_v47 = vpop.permute.xlu1 %524 }
  0xb0   :  { %2141 = vst [vmem:[#allocation44_spill] sm:$0xff] %v1692_v3  ;;  %2142 = vst [vmem:[#allocation45_spill] sm:$0xff] %v1695_v40  ;;  %v1722_v52 = vmul.f32 %v1425_v44, %v281_v49  ;;  %v1725_v6 = vmul.f32 %v1428_v45, %v278_v62  ;;  %v1734_v40 = vmul.f32 %v1428_v45, %v281_v49  ;;  %v670_v62 = vld [vmem:[%s2087_s0 + $0x10] sm:$0xf] }
  0xb1   :  { %2143 = vst [vmem:[#allocation46_spill] sm:$0xff] %v1698_v50  ;;  %2144 = vst [vmem:[#allocation47_spill] sm:$0xff] %v1701_v12  ;;  %v1728_v12 = vmul.f32 %v1428_v45, %v279_v11  ;;  %v1731_v50 = vmul.f32 %v1428_v45, %v280_v38  ;;  %v1736_v3 = vmul.f32 %v402_v39, %v358_v36  ;;  %v673_v39 = vld [vmem:[%s2087_s0 + $0x4c] sm:$0xf] }
  0xb2   :  { %2145 = vst [vmem:[#allocation48_spill] sm:$0xff] %v1713_v13  ;;  %2146 = vst [vmem:[#allocation49_spill] sm:$0xff] %v1716_v37  ;;  %v437_v37 = vmul.f32 %v409_v63, %v359_v4  ;;  %v439_v44 = vmul.f32 %v423_v10, %v361_v51  ;;  %v697_v11 = vrot.slane %v680_v33, %v1377_v25  ;;  %v671_v10 = vld [vmem:[%s2087_s0 + $0x24] sm:$0xf]  ;;  %v672_v63 = vld [vmem:[%s2087_s0 + $0x38] sm:$0xf] }
  0xb3   :  { %2147 = vst [vmem:[#allocation50_spill] sm:$0xff] %v1719_v43  ;;  %2148 = vst [vmem:[#allocation51_spill] sm:$0xff] %v1722_v52  ;;  %v1738_v43 = vmul.f32 %v416_v1, %v360_v5  ;;  %v690_v52 = vrot.slane %v680_v33, %v1375_v24  ;;  %v704_v38 = vrot.slane %v680_v33, %v1379_v26 }
  0xb4   :  { %2149 = vst [vmem:[#allocation52_spill] sm:$0xff] %v1736_v3  ;;  %v711_v13 = vrot.slane %v680_v33, %v1381_v27  ;;  %v1749_v45 = vmul.f32 %v1385_v29, %v1736_v3  ;;  %v1752_v49 = vmul.f32 %v1385_v29, %v437_v37  ;;  %v1768_v1 = vmul.f32 %v1385_v29, %v439_v44 }
  0xb5   :  { %2150 = vst [vmem:[#allocation53_spill] sm:$0xff] %v1738_v43  ;;  %v1765_v33 = vmul.f32 %v1385_v29, %v1738_v43  ;;  %v1771_v36 = vmul.f32 %v1388_v30, %v437_v37  ;;  %v1774_v4 = vmul.f32 %v1388_v30, %v439_v44  ;;  %v500_v5 = vmul.f32 %v1391_v31, %v1736_v3  ;;  %v516_v29 = vld [vmem:[%s2087_s0 + $0x5c] sm:$0xf] }
  0xb6   :  { %2151 = vst [vmem:[#allocation54_spill] sm:$0xff] %v1749_v45  ;;  %2152 = vst [vmem:[#allocation55_spill] sm:$0xff] %v1752_v49  ;;  %v501_v51 = vmul.f32 %v1391_v31, %v437_v37  ;;  %v502_v49 = vmul.f32 %v1391_v31, %v1738_v43  ;;  %v503_v45 = vmul.f32 %v1391_v31, %v439_v44  ;;  %v518_v31 = vld [vmem:[%s2087_s0 + $0x84] sm:$0xf]  ;;  %v519_v44 = vld [vmem:[%s2087_s0 + $0x98] sm:$0xf] }
  0xb7   :  { %2153 = vst [vmem:[#allocation56_spill] sm:$0xff] %v1765_v33  ;;  %2154 = vst [vmem:[#allocation57_spill] sm:$0xff] %v1768_v1  ;;  %v517_v1 = vld [vmem:[%s2087_s0 + $0x70] sm:$0xf]  ;;  %v683_v33 = vpop.permute.xlu1 %682  ;;  %v1792_v3 = vmul.f32 %v704_v38, %v672_v63  ;;  %v1794_v37 = vmul.f32 %v711_v13, %v673_v39  ;;  %v674_v43 = vld [vmem:[%s2087_s0 + $0x60] sm:$0xf]  ;;  %v581_v13 = vrot.slane %v525_v47, %v1381_v27 }
  0xb8   :  { %2155 = vst [vmem:[#allocation58_spill] sm:$0xff] %v1771_v36  ;;  %2156 = vst [vmem:[#allocation59_spill] sm:$0xff] %v1774_v4  ;;  %v1788_v4 = vmul.f32 %v690_v52, %v670_v62  ;;  %v1790_v36 = vmul.f32 %v697_v11, %v671_v10  ;;  %v560_v52 = vrot.slane %v525_v47, %v1375_v24  ;;  %v675_v38 = vld [vmem:[%s2087_s0 + $0x74] sm:$0xf]  ;;  %v676_v10 = vld [vmem:[%s2087_s0 + $0x88] sm:$0xf] }
  0xb9   :  { %v567_v62 = vrot.slane %v525_v47, %v1377_v25  ;;  %v574_v11 = vrot.slane %v525_v47, %v1379_v26  ;;  %v677_v63 = vld [vmem:[%s2087_s0 + $0x9c] sm:$0xf]  ;;  %v718_v39 = vrot.slane %v683_v33, %v1375_v24  ;;  %v725_v30 = vrot.slane %v683_v33, %v1377_v25  ;;  %s1874_s0 = sld [smem:[#allocation3 + $0x12]] }
  0xba   :  { %v732_v8 = vrot.slane %v683_v33, %v1379_v26  ;;  %v739_v47 = vrot.slane %v683_v33, %v1381_v27  ;;  %v1822_v61 = vmul.f32 %v560_v52, %v516_v29  ;;  %v1828_v23 = vmul.f32 %v581_v13, %v519_v44 }
  0xbb   :  { %v1824_v34 = vmul.f32 %v567_v62, %v517_v1  ;;  %v1826_v59 = vmul.f32 %v574_v11, %v518_v31  ;;  %v1830_v58 = vmul.f32 %v718_v39, %v674_v43  ;;  %v1832_v22 = vmul.f32 %v725_v30, %v675_v38 }
  0xbc   :  { %v1834_v57 = vmul.f32 %v732_v8, %v676_v10  ;;  %v1836_v24 = vmul.f32 %v739_v47, %v677_v63  ;;  %v346_v25 = vadd.f32 %v1621_v7, %v1531_v53  ;;  %v347_v26 = vadd.f32 %v1624_v19, %v1534_v54 }
  0xbd   :  { %v348_v27 = vadd.f32 %v1627_v42, %v1537_v55  ;;  %v349_v33 = vadd.f32 %v1630_v60, %v1540_v56  ;;  %v654_v30 = vmul.f32 %v1431_v46, %v1568_v28  ;;  %v655_v8 = vmul.f32 %v1431_v46, %v1570_v41 }
  0xbe   :  { %v656_v43 = vmul.f32 %v1431_v46, %v1572_v20  ;;  %v657_v53 = vmul.f32 %v1431_v46, %v1574_v35  ;;  %v504_v54 = vadd.f32 %v1486_v15, %v346_v25  ;;  %v505_v7 = vadd.f32 %v1489_v16, %v347_v26 }
  0xbf   :  { %v506_v55 = vadd.f32 %v1493_v17, %v348_v27  ;;  %v507_v56 = vadd.f32 %v1496_v18, %v349_v33  ;;  %v812_v60 = vmul.f32 %v1434_v48, %v1788_v4  ;;  %v813_v19 = vmul.f32 %v1434_v48, %v1790_v36 }
  0xc0   :  { %v814_v42 = vmul.f32 %v1434_v48, %v1792_v3  ;;  %v815_v1 = vmul.f32 %v1434_v48, %v1794_v37  ;;  %v662_v29 = vadd.f32 %v654_v30, %v504_v54  ;;  %v663_v15 = vadd.f32 %v655_v8, %v505_v7  ;;  %v2157_v7 = vld [vmem:[#allocation28_spill] sm:$0xff] }
  0xc1   :  { %v664_v31 = vadd.f32 %v656_v43, %v506_v55  ;;  %v665_v16 = vadd.f32 %v657_v53, %v507_v56  ;;  %v350_v17 = vadd.f32 %v1725_v6, %v1673_v2  ;;  %v351_v18 = vadd.f32 %v1728_v12, %v1676_v0  ;;  %v2158_v56 = vld [vmem:[#allocation20_spill] sm:$0xff] }
  0xc2   :  { %v352_v44 = vadd.f32 %v1731_v50, %v1679_v14  ;;  %v353_v52 = vadd.f32 %v1734_v40, %v1682_v9  ;;  %v820_v62 = vadd.f32 %v812_v60, %v662_v29  ;;  %v821_v11 = vadd.f32 %v813_v19, %v663_v15  ;;  %v2159_v60 = vld [vmem:[#allocation29_spill] sm:$0xff]  ;;  %v2162_v15 = vld [vmem:[#allocation22_spill] sm:$0xff] }
  0xc3   :  { %v822_v13 = vadd.f32 %v814_v42, %v664_v31  ;;  %v823_v38 = vadd.f32 %v815_v1, %v665_v16  ;;  %v508_v10 = vadd.f32 %v500_v5, %v350_v17  ;;  %v509_v63 = vadd.f32 %v501_v51, %v351_v18  ;;  %v2160_v42 = vld [vmem:[#allocation21_spill] sm:$0xff]  ;;  %v2161_v1 = vld [vmem:[#allocation30_spill] sm:$0xff]  ;;  %v2163_v31 = vld [vmem:[#allocation31_spill] sm:$0xff] }
  0xc4   :  { %v510_v39 = vadd.f32 %v502_v49, %v352_v44  ;;  %v511_v47 = vadd.f32 %v503_v45, %v353_v52  ;;  %v836_v2 = vcombine.low %v820_v62, %v821_v11  ;;  %v658_v0 = vmul.f32 %v1431_v46, %v1822_v61  ;;  %v2164_v18 = vld [vmem:[#allocation13_spill] sm:$0xff]  ;;  %v2165_v52 = vld [vmem:[#allocation14_spill] sm:$0xff]  ;;  %v2166_v11 = vld [vmem:[#allocation8_spill] sm:$0xff] }
  0xc5   :  { %v837_v6 = vcombine.low %v822_v13, %v823_v38  ;;  %v659_v14 = vmul.f32 %v1431_v46, %v1824_v34  ;;  %v660_v9 = vmul.f32 %v1431_v46, %v1826_v59  ;;  %v661_v40 = vmul.f32 %v1431_v46, %v1828_v23 }
  0xc6   :  { %v816_v50 = vmul.f32 %v1434_v48, %v1830_v58  ;;  %v817_v12 = vmul.f32 %v1434_v48, %v1832_v22  ;;  %v844_v45 = vrot.slane %v836_v2, %v1393_v32  ;;  %v666_v5 = vadd.f32 %v658_v0, %v508_v10  ;;  %v2167_v10 = vld [vmem:[#allocation15_spill] sm:$0xff] }
  0xc7   :  { %v851_v49 = vrot.slane %v837_v6, %v1393_v32  ;;  %v667_v51 = vadd.f32 %v659_v14, %v509_v63  ;;  %v668_v25 = vadd.f32 %v660_v9, %v510_v39  ;;  %v669_v26 = vadd.f32 %v661_v40, %v511_v47  ;;  %v2168_v39 = vld [vmem:[#allocation16_spill] sm:$0xff] }
  0xc8   :  { %v818_v27 = vmul.f32 %v1434_v48, %v1834_v57  ;;  %v819_v46 = vmul.f32 %v1434_v48, %v1836_v24  ;;  %v824_v8 = vadd.f32 %v816_v50, %v666_v5  ;;  %v310_v55 = vadd.f32 %v2157_v7, %v1501_v21  ;;  %v2169_v50 = vld [vmem:[#allocation9_spill] sm:$0xff]  ;;  %v2173_v7 = vld [vmem:[#allocation34_spill] sm:$0xff] }
  0xc9   :  { %v853_v33 = vcombine.high %v844_v45, %v851_v49  ;;  %v852_v30 = vcombine.low %v844_v45, %v851_v49  ;;  %v825_v43 = vadd.f32 %v817_v12, %v667_v51  ;;  %v311_v19 = vadd.f32 %v2159_v60, %v2158_v56  ;;  %v2174_v56 = vld [vmem:[#allocation26_spill] sm:$0xff]  ;;  %v2175_v60 = vld [vmem:[#allocation35_spill] sm:$0xff] }
  0xca   :  { %v826_v53 = vadd.f32 %v818_v27, %v668_v25  ;;  %v827_v54 = vadd.f32 %v819_v46, %v669_v26  ;;  %v312_v29 = vadd.f32 %v2161_v1, %v2160_v42  ;;  %v313_v16 = vadd.f32 %v2163_v31, %v2162_v15  ;;  %v2177_v15 = vld [vmem:[#allocation7_spill] sm:$0xff] }
  0xcb   :  { %880 = vrot.lane.b32.xlu1 %v853_v33, %s1308_s14  ;;  %876 = vrot.lane.b32.xlu0 %v852_v30, %s1308_s14  ;;  %v854_v48 = vcombine.low %v824_v8, %v825_v43  ;;  %v1907_v17 = vstv %s1874_s0  ;;  %v468_v44 = vadd.f32 %v2164_v18, %v310_v55  ;;  %v469_v62 = vadd.f32 %v2165_v52, %v311_v19  ;;  %v2170_v30 = vld [vmem:[#allocation24_spill] sm:$0xff]  ;;  %v2171_v8 = vld [vmem:[#allocation33_spill] sm:$0xff]  ;;  %v2180_v52 = vld [vmem:[#allocation18_spill] sm:$0xff] }
  0xcc   :  { %v855_v21 = vcombine.low %v826_v53, %v827_v54  ;;  %v618_v13 = vmul.f32 %v2166_v11, %v1568_v28  ;;  %v470_v63 = vadd.f32 %v2167_v10, %v312_v29  ;;  %v471_v47 = vadd.f32 %v2168_v39, %v313_v16  ;;  %v2172_v54 = vld [vmem:[#allocation25_spill] sm:$0xff]  ;;  %v2176_v29 = vld [vmem:[#allocation11_spill] sm:$0xff]  ;;  %v2178_v16 = vld [vmem:[#allocation12_spill] sm:$0xff] }
  0xcd   :  { %v862_v38 = vrot.slane %v854_v48, %v1393_v32  ;;  %v619_v2 = vmul.f32 %v2166_v11, %v1570_v41  ;;  %v620_v0 = vmul.f32 %v2166_v11, %v1572_v20  ;;  %v621_v14 = vmul.f32 %v2166_v11, %v1574_v35  ;;  %v2179_v18 = vld [vmem:[#allocation17_spill] sm:$0xff] }
  0xce   :  { %v869_v6 = vrot.slane %v855_v21, %v1393_v32  ;;  %v626_v9 = vadd.f32 %v618_v13, %v468_v44  ;;  %v776_v12 = vmul.f32 %v2169_v50, %v1788_v4  ;;  %v777_v45 = vmul.f32 %v2169_v50, %v1790_v36  ;;  %v2181_v13 = vld [vmem:[#allocation10_spill] sm:$0xff] }
  0xcf   :  { %v627_v40 = vadd.f32 %v619_v2, %v469_v62  ;;  %v778_v49 = vmul.f32 %v2169_v50, %v1792_v3  ;;  %v628_v25 = vadd.f32 %v620_v0, %v470_v63  ;;  %v629_v26 = vadd.f32 %v621_v14, %v471_v47 }
  0xd0   :  { %v871_v5 = vcombine.high %v862_v38, %v869_v6  ;;  %v870_v51 = vcombine.low %v862_v38, %v869_v6  ;;  %v779_v27 = vmul.f32 %v2169_v50, %v1794_v37  ;;  %v784_v46 = vadd.f32 %v776_v12, %v626_v9 }
  0xd1   :  { %v785_v33 = vadd.f32 %v777_v45, %v627_v40  ;;  %v329_v43 = vadd.f32 %v2171_v8, %v2170_v30  ;;  %v786_v53 = vadd.f32 %v778_v49, %v628_v25  ;;  %v330_v55 = vadd.f32 %v2173_v7, %v2172_v54  ;;  %v2184_v25 = vld [vmem:[#allocation40_spill] sm:$0xff]  ;;  %v2186_v30 = vld [vmem:[#allocation41_spill] sm:$0xff]  ;;  %v2189_v54 = vld [vmem:[#allocation50_spill] sm:$0xff] }
  0xd2   :  { %882 = vrot.lane.b32.xlu1 %v871_v5, %s1308_s14  ;;  %878 = vrot.lane.b32.xlu0 %v870_v51, %s1308_s14  ;;  %v331_v19 = vadd.f32 %v2175_v60, %v2174_v56  ;;  %v599_v48 = vstv %s1898_s13  ;;  %v787_v42 = vadd.f32 %v779_v27, %v629_v26  ;;  %v478_v31 = vmul.f32 %v2177_v15, %v2176_v29  ;;  %v2183_v5 = vld [vmem:[#allocation32_spill] sm:$0xff]  ;;  %v2187_v8 = vld [vmem:[#allocation49_spill] sm:$0xff]  ;;  %v2191_v56 = vld [vmem:[#allocation51_spill] sm:$0xff] }
  0xd3   :  { %v955_v1 = vcombine.low %v784_v46, %v785_v33  ;;  %v480_v21 = vmul.f32 %v2177_v15, %v2178_v16  ;;  %v487_v44 = vadd.f32 %v2179_v18, %v329_v43  ;;  %v636_v38 = vmul.f32 %v2181_v13, %v1568_v28  ;;  %v2185_v26 = vld [vmem:[#allocation48_spill] sm:$0xff] }
  0xd4   :  { %v489_v62 = vadd.f32 %v2180_v52, %v331_v19  ;;  %v637_v10 = vmul.f32 %v2181_v13, %v1570_v41  ;;  %v956_v63 = vcombine.low %v786_v53, %v787_v42  ;;  %v638_v2 = vmul.f32 %v2181_v13, %v1572_v20  ;;  %v2188_v53 = vld [vmem:[#allocation42_spill] sm:$0xff]  ;;  %v2192_v19 = vld [vmem:[#allocation52_spill] sm:$0xff]  ;;  %v2195_v52 = vld [vmem:[#allocation59_spill] sm:$0xff] }
  0xd5   :  { %v963_v39 = vrot.slane %v955_v1, %v1393_v32  ;;  %v488_v47 = vadd.f32 %v480_v21, %v330_v55  ;;  %v639_v6 = vmul.f32 %v2181_v13, %v1574_v35  ;;  %v794_v14 = vmul.f32 %v1907_v17, %v1788_v4  ;;  %v2182_v35 = vld [vmem:[#allocation23_spill] sm:$0xff]  ;;  %v2193_v1 = vld [vmem:[#allocation53_spill] sm:$0xff]  ;;  %v2194_v21 = vld [vmem:[#allocation58_spill] sm:$0xff] }
  0xd6   :  { %v645_v0 = vadd.f32 %v637_v10, %v487_v44  ;;  %v795_v9 = vmul.f32 %v1907_v17, %v1790_v36  ;;  %v970_v40 = vrot.slane %v956_v63, %v1393_v32  ;;  %v796_v12 = vmul.f32 %v1907_v17, %v1792_v3  ;;  %v2190_v55 = vld [vmem:[#allocation43_spill] sm:$0xff] }
  0xd7   :  { %v646_v41 = vadd.f32 %v638_v2, %v488_v47  ;;  %v797_v45 = vmul.f32 %v1907_v17, %v1794_v37  ;;  %v647_v20 = vadd.f32 %v639_v6, %v489_v62  ;;  %v328_v51 = vadd.f32 %v2183_v5, %v2182_v35 }
  0xd8   :  { %v1966_v49 = vadd.f32 %v795_v9, %v645_v0  ;;  %v332_v27 = vadd.f32 %v2185_v26, %v2184_v25  ;;  %v972_v36 = vcombine.high %v963_v39, %v970_v40  ;;  %v971_v46 = vcombine.low %v963_v39, %v970_v40 }
  0xd9   :  { %v1972_v33 = vadd.f32 %v796_v12, %v646_v41  ;;  %v333_v3 = vadd.f32 %v2187_v8, %v2186_v30  ;;  %v1976_v43 = vadd.f32 %v797_v45, %v647_v20  ;;  %v486_v37 = vadd.f32 %v478_v31, %v328_v51  ;;  %v2199_v8 = vld [vmem:[#allocation36_spill] sm:$0xff] }
  0xda   :  { %v334_v7 = vadd.f32 %v2189_v54, %v2188_v53  ;;  %v335_v60 = vadd.f32 %v2191_v56, %v2190_v55  ;;  %999 = vrot.lane.b32.xlu1 %v972_v36, %s1308_s14  ;;  %995 = vrot.lane.b32.xlu0 %v971_v46, %s1308_s14  ;;  %v482_v42 = vmul.f32 %v2177_v15, %v2192_v19  ;;  %v757_v44 = vstv %s1944_s15  ;;  %v2197_v36 = vld [vmem:[#allocation19_spill] sm:$0xff]  ;;  %v2202_v53 = vld [vmem:[#allocation45_spill] sm:$0xff]  ;;  %v2204_v55 = vld [vmem:[#allocation46_spill] sm:$0xff] }
  0xdb   :  { %v484_v16 = vmul.f32 %v2177_v15, %v2193_v1  ;;  %v491_v18 = vadd.f32 %v2194_v21, %v333_v3  ;;  %v644_v31 = vadd.f32 %v636_v38, %v486_v37  ;;  %v640_v10 = vmul.f32 %v2181_v13, %v1822_v61  ;;  %v2198_v46 = vld [vmem:[#allocation27_spill] sm:$0xff]  ;;  %v2201_v37 = vld [vmem:[#allocation37_spill] sm:$0xff]  ;;  %v2207_v1 = vld [vmem:[#allocation54_spill] sm:$0xff] }
  0xdc   :  { %v493_v62 = vadd.f32 %v2195_v52, %v335_v60  ;;  %v641_v63 = vmul.f32 %v2181_v13, %v1824_v34  ;;  %v490_v39 = vadd.f32 %v482_v42, %v332_v27  ;;  %v642_v2 = vmul.f32 %v2181_v13, %v1826_v59  ;;  %v2206_v19 = vld [vmem:[#allocation47_spill] sm:$0xff] }
  0xdd   :  { %v492_v47 = vadd.f32 %v484_v16, %v334_v7  ;;  %v643_v15 = vmul.f32 %v2181_v13, %v1828_v23  ;;  %v802_v6 = vadd.f32 %v794_v14, %v644_v31  ;;  %v798_v38 = vmul.f32 %v1907_v17, %v1830_v58  ;;  %v2203_v7 = vld [vmem:[#allocation38_spill] sm:$0xff]  ;;  %v2209_v16 = vld [vmem:[#allocation56_spill] sm:$0xff] }
  0xde   :  { %v649_v0 = vadd.f32 %v641_v63, %v491_v18  ;;  %v799_v9 = vmul.f32 %v1907_v17, %v1832_v22  ;;  %v648_v40 = vadd.f32 %v640_v10, %v490_v39  ;;  %v800_v45 = vmul.f32 %v1907_v17, %v1834_v57 }
  0xdf   :  { %v650_v41 = vadd.f32 %v642_v2, %v492_v47  ;;  %v651_v12 = vadd.f32 %v643_v15, %v493_v62  ;;  %v801_v20 = vmul.f32 %v1907_v17, %v1836_v24  ;;  %v2196_v5 = vstv %s1344_s23  ;;  %v2200_v17 = vld [vmem:[#allocation44_spill] sm:$0xff]  ;;  %s1309_s23 = smov 112  }
  0xe0   :  { %v2007_v35 = vadd.f32 %v799_v9, %v649_v0  ;;  %v2009_v13 = vadd.f32 %v798_v38, %v648_v40  ;;  %v442_v51 = vmul.f32 %v2196_v5, %v2176_v29  ;;  %v600_v26 = vmul.f32 %v599_v48, %v1568_v28  ;;  %v2205_v29 = vld [vmem:[#allocation39_spill] sm:$0xff] }
  0xe1   :  { %v2011_v14 = vadd.f32 %v800_v45, %v650_v41  ;;  %v2016_v25 = vadd.f32 %v801_v20, %v651_v12  ;;  %v758_v27 = vmul.f32 %v757_v44, %v1788_v4  ;;  %v292_v30 = vadd.f32 %v2198_v46, %v2197_v36  ;;  %v2208_v48 = vld [vmem:[#allocation55_spill] sm:$0xff]  ;;  %v2210_v44 = vld [vmem:[#allocation57_spill] sm:$0xff] }
  0xe2   :  { %v314_v3 = vadd.f32 %v2200_v17, %v2199_v8  ;;  %v315_v54 = vadd.f32 %v2202_v53, %v2201_v37  ;;  %v316_v56 = vadd.f32 %v2204_v55, %v2203_v7  ;;  %v317_v42 = vadd.f32 %v2206_v19, %v2205_v29 }
  0xe3   :  { %v450_v60 = vadd.f32 %v442_v51, %v292_v30  ;;  %v622_v52 = vmul.f32 %v2166_v11, %v1822_v61  ;;  %v623_v62 = vmul.f32 %v2166_v11, %v1824_v34  ;;  %v624_v10 = vmul.f32 %v2166_v11, %v1826_v59 }
  0xe4   :  { %v472_v28 = vadd.f32 %v2207_v1, %v314_v3  ;;  %v473_v4 = vadd.f32 %v2208_v48, %v315_v54  ;;  %v474_v21 = vadd.f32 %v2209_v16, %v316_v56  ;;  %v475_v31 = vadd.f32 %v2210_v44, %v317_v42 }
  0xe5   :  { %v608_v18 = vadd.f32 %v600_v26, %v450_v60  ;;  %v625_v63 = vmul.f32 %v2166_v11, %v1828_v23  ;;  %v780_v39 = vmul.f32 %v2169_v50, %v1830_v58  ;;  %v781_v47 = vmul.f32 %v2169_v50, %v1832_v22 }
  0xe6   :  { %v630_v15 = vadd.f32 %v622_v52, %v472_v28  ;;  %v631_v0 = vadd.f32 %v623_v62, %v473_v4  ;;  %v782_v61 = vmul.f32 %v2169_v50, %v1834_v57  ;;  %v632_v34 = vadd.f32 %v624_v10, %v474_v21 }
  0xe7   :  { %v2046_v2 = vadd.f32 %v758_v27, %v608_v18  ;;  %v633_v38 = vadd.f32 %v625_v63, %v475_v31  ;;  %v783_v59 = vmul.f32 %v2169_v50, %v1836_v24  ;;  %v2211_v5 = vlaneseq }
  0xe8   :  { %v788_v9 = vadd.f32 %v780_v39, %v630_v15  ;;  %v789_v23 = vadd.f32 %v781_v47, %v631_v0  ;;  %v790_v11 = vadd.f32 %v782_v61, %v632_v34 }
  0xe9   :  { %v791_v40 = vadd.f32 %v783_v59, %v633_v38  ;;  %v885_v51 = vand.u32 127, %v2211_v5 }
  0xea   :  { %v973_v58 = vcombine.low %v788_v9, %v789_v23  ;;  %v1181_v23 = vstv %s2090_s3 }
  0xeb   :  { %v974_v41 = vcombine.low %v790_v11, %v791_v40  ;;  %vm886_vm0 = vcmp.lt.s32.totalorder %v885_v51, 127  ;;  %vm1119_vm1 = vcmp.lt.s32.totalorder %v885_v51, 112 }
  0xec   :  { %v981_v22 = vrot.slane %v973_v58, %v1393_v32 }
  0xed   :  { %v988_v12 = vrot.slane %v974_v41, %v1393_v32 }
  0xef   :  { %v990_v45 = vcombine.high %v981_v22, %v988_v12  ;;  %v989_v20 = vcombine.low %v981_v22, %v988_v12 }
 0x13d   :  { %v881_v57 = vpop.permute.xlu1 %880  ;;  %v877_v26 = vpop.permute.xlu0 %876 }
 0x13e   :  { %v887_v27 = vsel %vm886_vm0, %v877_v26, %v881_v57  ;;  %v889_v24 = vsel %vm886_vm0, %v881_v57, %v877_v26 }
 0x13f   :  { %v895_v50 = vcombine.low %v887_v27, %v889_v24  ;;  %v896_v36 = vcombine.high %v887_v27, %v889_v24 }
 0x141   :  { %v903_v46 = vrot.slane %v895_v50, %v1393_v32  ;;  %v910_v30 = vrot.slane %v896_v36, %v1393_v32 }
 0x143   :  { %v911_v8 = vcombine.high %v903_v46, %v903_v46  ;;  %v912_v17 = vcombine.high %v910_v30, %v910_v30  ;;  %v939_v3 = vadd.f32 %v903_v46, %v802_v6  ;;  %v941_v37 = vadd.f32 %v910_v30, %v1972_v33 }
 0x144   :  { %v883_v53 = vpop.permute.xlu1 %882  ;;  %v879_v54 = vpop.permute.xlu0 %878 }
 0x145   :  { %v940_v7 = vadd.f32 %v911_v8, %v1966_v49  ;;  %v942_v55 = vadd.f32 %v912_v17, %v1976_v43  ;;  %v888_v56 = vsel %vm886_vm0, %v879_v54, %v883_v53  ;;  %v890_v60 = vsel %vm886_vm0, %v883_v53, %v879_v54 }
 0x146   :  { %v913_v29 = vcombine.low %v888_v56, %v890_v60  ;;  %v914_v19 = vcombine.high %v888_v56, %v890_v60 }
 0x147   :  { %v1071_v42 = vcombine.low %v939_v3, %v940_v7  ;;  %v1072_v1 = vcombine.low %v941_v37, %v942_v55 }
 0x148   :  { %v921_v28 = vrot.slane %v913_v29, %v1393_v32  ;;  %v928_v6 = vrot.slane %v914_v19, %v1393_v32 }
 0x149   :  { %v1079_v33 = vrot.slane %v1071_v42, %v1393_v32  ;;  %v1086_v48 = vrot.slane %v1072_v1, %v1393_v32 }
 0x14a   :  { %v929_v4 = vcombine.high %v921_v28, %v921_v28  ;;  %v930_v49 = vcombine.high %v928_v6, %v928_v6  ;;  %v943_v21 = vadd.f32 %v921_v28, %v2009_v13  ;;  %v945_v44 = vadd.f32 %v928_v6, %v2011_v14 }
 0x14b   :  { %v1088_v16 = vcombine.high %v1079_v33, %v1086_v48  ;;  %v1087_v43 = vcombine.low %v1079_v33, %v1086_v48 }
 0x14c   :  { %v944_v18 = vadd.f32 %v929_v4, %v2007_v35  ;;  %v946_v31 = vadd.f32 %v930_v49, %v2016_v25  ;;  %v1000_v35 = vpop.permute.xlu1 %999  ;;  %v996_v14 = vpop.permute.xlu0 %995 }
 0x14d   :  { %1115 = vrot.lane.b32.xlu1 %v1088_v16, %s1309_s23  ;;  %1111 = vrot.lane.b32.xlu0 %v1087_v43, %s1309_s23  ;;  %v1003_v25 = vsel %vm886_vm0, %v996_v14, %v1000_v35  ;;  %v1005_v47 = vsel %vm886_vm0, %v1000_v35, %v996_v14 }
 0x14e   :  { %v1089_v52 = vcombine.low %v943_v21, %v944_v18  ;;  %v1090_v62 = vcombine.low %v945_v44, %v946_v31  ;;  %v1011_v15 = vcombine.low %v1003_v25, %v1005_v47 }
 0x150   :  { %v1097_v10 = vrot.slane %v1089_v52, %v1393_v32  ;;  %v1104_v63 = vrot.slane %v1090_v62, %v1393_v32  ;;  %v1019_v0 = vrot.slane %v1011_v15, %v1393_v32 }
 0x151   :  { %1001 = vrot.lane.b32.xlu1 %v990_v45, %s1308_s14  ;;  %997 = vrot.lane.b32.xlu0 %v989_v20, %s1308_s14 }
 0x152   :  { %v1106_v13 = vcombine.high %v1097_v10, %v1104_v63  ;;  %v1105_v39 = vcombine.low %v1097_v10, %v1104_v63  ;;  %v1055_v11 = vadd.f32 %v1019_v0, %v2046_v2 }
 0x155   :  { %1117 = vrot.lane.b32.xlu1 %v1106_v13, %s1309_s23  ;;  %1113 = vrot.lane.b32.xlu0 %v1105_v39, %s1309_s23 }
 0x1bf   :  { %v1116_v61 = vpop.permute.xlu1 %1115  ;;  %v1112_v34 = vpop.permute.xlu0 %1111 }
 0x1c0   :  { %v1120_v38 = vsel %vm1119_vm1, %v1112_v34, %v1116_v61  ;;  %v1122_v59 = vsel %vm1119_vm1, %v1116_v61, %v1112_v34 }
 0x1c1   :  { %v1128_v9 = vcombine.low %v1120_v38, %v1122_v59 }
 0x1c3   :  { %v1136_v40 = vrot.slane %v1128_v9, %v1393_v32  ;;  %v1002_v58 = vpop.permute.xlu1 %1001  ;;  %v998_v41 = vpop.permute.xlu0 %997 }
 0x1c5   :  { %v1172_v22 = vadd.f32 %v1136_v40, %v1055_v11 }
 0x1c7   :  { %v1182_v12 = vadd.f32 %v1181_v23, %v1172_v22  ;;  %v1118_v45 = vpop.permute.xlu1 %1117  ;;  %v1114_v20 = vpop.permute.xlu0 %1113 }
 0x1c9   :  { %1193 = vst [vmem:[#allocation5] sm:$0xf] %v1182_v12 }
 0x1d0   :  { %v1218_v5 = vld [vmem:[#allocation5] sm:$0xf] }
 0x1d1   :  { %1219 = vst [vmem:[%s2091_s4] sm:$0xf] %v1218_v5 }
 0x1d2   :  { %1236 = vsyncpa [#allocation4], 1 }

</bundles_post_ra>
